<compile_context>
chip_gen: v5e
topology: v5e:2x2
jax: 0.10.0
libtpu: 0.0.40
codegen_flags: <defaults>
</compile_context>

<pallas_src>
import numpy as np
import jax
import jax.numpy as jnp
from jax.experimental import pallas as pl
from jax.experimental.pallas import tpu as pltpu

NUM_CLASSES = 3
N_ANCHORS = 3
V = 5 + NUM_CLASSES              # per-anchor vector: [conf, tx, ty, tw, th, c0, c1, c2]
COUT = N_ANCHORS * V             # 24 head output channels
CIN = 4                          # synthetic backbone channels
OUT_FIELDS = 8                   # output rows per anchor: [conf, x1, y1, x2, y2, cls, keep, pad]
STRIDES = {13: 32, 26: 16, 52: 8}
SCALE_KEYS = (13, 26, 52)

# anchor-major -> field-major channel permutation: original row a*V+f -> new row f*3+a
_FIELD_MAJOR_PERM = tuple(a * V + f for f in range(V) for a in range(N_ANCHORS))


# ----------------------------- fused decode kernel ---------------------------

def _make_kernel(thresh):
    """Fused per-scale 1x1-conv head + YOLO decode on field-major (3, TN) slabs.

    Only plain Python scalars are closed over (no captured arrays)."""
    thresh = float(thresh)

    def kernel(xexp_ref, w_ref, geo_ref, anc_ref, o_ref):
        xe = xexp_ref[...]                        # (3*(CIN+1), TN) block-diag augmented feats
        W = w_ref[...]                            # (24, 3*(CIN+1)) field-major heads (+bias col)
        geo = geo_ref[...]                        # (3, TN): [h_idx*t, w_idx*t, t] per column
        anc = anc_ref[...]                        # (6, TN): [aw0,aw1,aw2, ah0,ah1,ah2] per column

        # all three per-scale 1x1-conv heads + biases in one matmul
        head = jnp.dot(W, xe, preferred_element_type=jnp.float32)    # (24, TN), field-major

        conf = jax.nn.sigmoid(head[0:3, :])       # _filter: sigmoid on conf only
        tx = head[3:6, :]
        ty = head[6:9, :]
        tw = head[9:12, :]
        th = head[12:15, :]
        c0 = head[15:18, :]
        c1 = head[18:21, :]
        c2 = head[21:24, :]

        hT = geo[0:1, :]
        wT = geo[1:2, :]
        tcol = geo[2:3, :]
        aw = anc[0:3, :]
        ah = anc[3:6, :]

        # _parse box math (raw tx/ty offsets, as in the reference)
        cx = wT + tx * tcol                       # (h_idx + ty) * t == h_idx*t + ty*t
        cy = hT + ty * tcol
        bw = aw * jnp.exp(tw)
        bh = ah * jnp.exp(th)
        x1 = cx - 0.5 * bw
        y1 = cy - 0.5 * bh
        x2 = x1 + bw
        y2 = y1 + bh

        # argmax over 3 class logits; strict '>' gives first-max-wins (torch.argmax ties)
        cls = jnp.where(c1 > c0, 1.0, 0.0)
        cls = jnp.where(c2 > jnp.maximum(c0, c1), 2.0, cls)

        keep = jnp.where(conf > thresh, 1.0, 0.0)

        # single full-block (24, TN) store
        out = jnp.concatenate(
            [conf, x1, y1, x2, y2, cls, keep, jnp.zeros_like(conf)], axis=0)
        o_ref[...] = out

    return kernel


def _choose_lane_tiles(mtot):
    """Pick >=2 even lane tiles when possible (v7x megacore); else one tile."""
    nblk = mtot // 128
    for n in range(2, 9):
        if nblk % n == 0:
            return mtot // n, n
    return mtot, 1


def _fused_detect(x_exp, w_cat, geo, anc, *, thresh, tn, ntiles):
    K, mtot = x_exp.shape
    kernel = _make_kernel(thresh)
    return pl.pallas_call(
        kernel,
        out_shape=jax.ShapeDtypeStruct((COUT, mtot), jnp.float32),
        grid=(ntiles,),
        in_specs=[pl.BlockSpec((K, tn), lambda i: (0, i)),
                  pl.BlockSpec((COUT, K), lambda i: (0, 0)),
                  pl.BlockSpec((3, tn), lambda i: (0, i)),
                  pl.BlockSpec((6, tn), lambda i: (0, i))],
        out_specs=pl.BlockSpec((COUT, tn), lambda i: (0, i)),
        compiler_params=pltpu.CompilerParams(dimension_semantics=("parallel",)),
    )(x_exp, w_cat, geo, anc)


# ------------------------------ cached pipeline ------------------------------

_PIPELINE_CACHE = {}


def _get_pipeline(thresh, anchors, shape):
    N, C, H, W = shape
    anchors_key = tuple(
        (k, tuple(tuple(float(v) for v in a) for a in anchors[k])) for k in SCALE_KEYS)
    cache_key = (float(thresh), N, C, H, W, anchors_key)
    hit = _PIPELINE_CACHE.get(cache_key)
    if hit is not None:
        return hit

    assert H == W and H % 32 == 0, "input must be square with side divisible by 32"

    # per-scale meta: (key, grid, stride, M, column offset); scale order 13, 26, 52
    scale_meta = []
    off = 0
    for key in SCALE_KEYS:
        t = STRIDES[key]
        G = H // t
        M = N * G * G
        scale_meta.append((key, G, t, M, off))
        off += M
    m_raw = off
    mtot = max(128, ((m_raw + 127) // 128) * 128)       # lane-dense padding
    pad = mtot - m_raw
    tn, ntiles = _choose_lane_tiles(mtot)

    # host-precomputed per-column constants (no index math inside the kernel)
    geo_np = np.zeros((3, mtot), np.float32)
    anc_np = np.zeros((6, mtot), np.float32)
    for key, G, t, M, o in scale_meta:
        m = np.arange(G * G)
        geo_np[0, o:o + M] = np.tile((m // G).astype(np.float32) * t, N)   # h_idx * t
        geo_np[1, o:o + M] = np.tile((m % G).astype(np.float32) * t, N)    # w_idx * t
        geo_np[2, o:o + M] = float(t)
        for a in range(N_ANCHORS):
            anc_np[a, o:o + M] = anchors[key][a][0]
            anc_np[N_ANCHORS + a, o:o + M] = anchors[key][a][1]
    geo = jnp.asarray(geo_np)
    anc = jnp.asarray(anc_np)

    perm = jnp.asarray(_FIELD_MAJOR_PERM, dtype=jnp.int32)
    kaug = C + 1
    n_scales = len(scale_meta)

    def pipeline(x, params, geo, anc):
        # TODO(synk): yoloV3_net is not defined in the reference module; backbone is a
        # deterministic hierarchical avg-pool + per-scale 1x1-conv head stand-in.
        g52, g26, g13 = H // 8, H // 16, H // 32
        p52 = x.reshape(N, C, g52, H // g52, g52, W // g52).mean(axis=(3, 5))
        p26 = p52.reshape(N, C, g26, 2, g26, 2).mean(axis=(3, 5))
        p13 = p26.reshape(N, C, g13, 2, g13, 2).mean(axis=(3, 5))
        feats = {13: p13, 26: p26, 52: p52}

        xexp_blocks = []
        wcat_blocks = []
        for s, (key, G, t, M, o) in enumerate(scale_meta):
            # (C, M) with columns ordered (n, h, w) to match torch nonzero ordering
            feat = jnp.transpose(feats[key], (1, 0, 2, 3)).reshape(C, M).astype(jnp.float32)
            xexp_blocks.append(jnp.concatenate([
                jnp.zeros((s * kaug, M), jnp.float32),
                feat,
                jnp.ones((1, M), jnp.float32),                        # bias lane
                jnp.zeros(((n_scales - 1 - s) * kaug, M), jnp.float32),
            ], axis=0))
            w, b = params[key]
            wcat_blocks.append(jnp.concatenate(
                [w[perm, :], b[perm, :]], axis=1).astype(jnp.float32))  # (24, C+1), field-major
        if pad:
            xexp_blocks.append(jnp.zeros((n_scales * kaug, pad), jnp.float32))

        x_exp = jnp.concatenate(xexp_blocks, axis=1)    # (3*(C+1), mtot) block-diag augmented
        w_cat = jnp.concatenate(wcat_blocks, axis=1)    # (24, 3*(C+1))

        return _fused_detect(x_exp, w_cat, geo, anc, thresh=thresh, tn=tn, ntiles=ntiles)

    entry = (jax.jit(pipeline), geo, anc, scale_meta, mtot)
    _PIPELINE_CACHE[cache_key] = entry
    return entry


# ------------------------------ Detector forward -----------------------------

def init_params(key):
    """Stand-in per-scale 1x1-conv head params in the original anchor-major layout."""
    params = {}
    for k in SCALE_KEYS:
        key, k1, k2 = jax.random.split(key, 3)
        w = jax.random.normal(k1, (COUT, CIN), jnp.float32) * 0.1
        b = jax.random.normal(k2, (COUT, 1), jnp.float32) * 0.1
        params[k] = (w, b)
    return params


def detector_forward(x, thresh, anchors, params):
    N, C, H, W = x.shape
    pipeline, geo, anc, scale_meta, _ = _get_pipeline(float(thresh), anchors, (N, C, H, W))

    dense = pipeline(x, params, geo, anc)                               # (24, mtot)
    dense = np.asarray(jax.device_get(jax.block_until_ready(dense)))    # single host sync

    all_boxes = []
    for key, G, t, M, off in scale_meta:
        d = dense[:, off:off + M]                                        # (24, M), field-major
        # rows ordered (n, h, w, anchor), matching torch nonzero() ordering
        rows = d.reshape(OUT_FIELDS, N_ANCHORS, M).transpose(2, 1, 0)
        rows = rows.reshape(M * N_ANCHORS, OUT_FIELDS)
        kept = rows[:, 6] > 0.5                 # dynamic-shape gather stays on host
        all_boxes.append(rows[kept][:, :6])     # [conf, x1, y1, x2, y2, class]

    return np.concatenate(all_boxes, axis=0)


if __name__ == "__main__":
    key = jax.random.PRNGKey(0)
    k_in, k_p = jax.random.split(key)

    # 128x128 input -> grids 4/8/16 for strides 32/16/8 (2688->672 total columns, padded to 768)
    x = jax.random.normal(k_in, (2, CIN, 128, 128), jnp.float32)   # NCHW
    params = init_params(k_p)
    anchors = {
        13: [[116, 90], [156, 198], [373, 326]],
        26: [[30, 61], [62, 45], [59, 119]],
        52: [[10, 13], [16, 30], [33, 23]],
    }

    boxes = detector_forward(x, thresh=0.5, anchors=anchors, params=params)
    assert boxes.ndim == 2 and boxes.shape[1] == 6

    # second call reuses the cached jitted pipeline (no recompilation)
    boxes2 = detector_forward(x, thresh=0.5, anchors=anchors, params=params)
    assert boxes2.shape == boxes.shape

    print("KERNEL_OK")
</pallas_src>

<mosaic_0001>
module attributes {stable_mosaic.version = 11 : i64} {
  func.func @kernel(%arg0: i32, %arg1: memref<15x384xf32, #tpu.memory_space<vmem>>, %arg2: memref<24x15xf32, #tpu.memory_space<vmem>>, %arg3: memref<3x384xf32, #tpu.memory_space<vmem>>, %arg4: memref<6x384xf32, #tpu.memory_space<vmem>>, %arg5: memref<24x384xf32, #tpu.memory_space<vmem>>) attributes {dimension_semantics = [#tpu.dimension_semantics<parallel>], iteration_bounds = array<i64: 2>, scalar_prefetch = 0 : i64, scratch_operands = 0 : i64, tpu.core_type = #tpu.core_type<tc>, window_params = [{transform_indices = @transform_0, window_bounds = array<i64: 15, 384>}, {pipeline_mode = #tpu.pipeline_mode<synchronous>, transform_indices = @transform_1, window_bounds = array<i64: 24, 15>}, {transform_indices = @transform_2, window_bounds = array<i64: 3, 384>}, {transform_indices = @transform_3, window_bounds = array<i64: 6, 384>}, {transform_indices = @transform_4, window_bounds = array<i64: 24, 384>}]} {
    %c0 = arith.constant 0 : index
    %c0_0 = arith.constant 0 : index
    %0 = vector.load %arg1[%c0, %c0_0] : memref<15x384xf32, #tpu.memory_space<vmem>>, vector<15x384xf32>
    %c0_1 = arith.constant 0 : index
    %c0_2 = arith.constant 0 : index
    %1 = vector.load %arg2[%c0_1, %c0_2] : memref<24x15xf32, #tpu.memory_space<vmem>>, vector<24x15xf32>
    %c0_3 = arith.constant 0 : index
    %c0_4 = arith.constant 0 : index
    %2 = vector.load %arg3[%c0_3, %c0_4] : memref<3x384xf32, #tpu.memory_space<vmem>>, vector<3x384xf32>
    %c0_5 = arith.constant 0 : index
    %c0_6 = arith.constant 0 : index
    %3 = vector.load %arg4[%c0_5, %c0_6] : memref<6x384xf32, #tpu.memory_space<vmem>>, vector<6x384xf32>
    %cst = arith.constant dense<0.000000e+00> : vector<24x384xf32>
    %4 = tpu.matmul %1, %0, %cst {dimension_numbers = #tpu.dot_dimension_numbers<[1], [0], [0], [1], [0, 0, 1, 1], [], []>} : vector<24x15xf32>, vector<15x384xf32>, vector<24x384xf32> -> vector<24x384xf32>
    %5 = vector.extract_strided_slice %4 {offsets = [0, 0], sizes = [3, 384], strides = [1, 1]} : vector<24x384xf32> to vector<3x384xf32>
    %6 = arith.negf %5 : vector<3x384xf32>
    %7 = math.exp %6 : vector<3x384xf32>
    %cst_7 = arith.constant 1.000000e+00 : f32
    %8 = vector.broadcast %cst_7 : f32 to vector<3x384xf32>
    %9 = arith.addf %8, %7 : vector<3x384xf32>
    %10 = arith.divf %8, %9 : vector<3x384xf32>
    %11 = vector.extract_strided_slice %4 {offsets = [3, 0], sizes = [3, 384], strides = [1, 1]} : vector<24x384xf32> to vector<3x384xf32>
    %12 = vector.extract_strided_slice %4 {offsets = [6, 0], sizes = [3, 384], strides = [1, 1]} : vector<24x384xf32> to vector<3x384xf32>
    %13 = vector.extract_strided_slice %4 {offsets = [9, 0], sizes = [3, 384], strides = [1, 1]} : vector<24x384xf32> to vector<3x384xf32>
    %14 = vector.extract_strided_slice %4 {offsets = [12, 0], sizes = [3, 384], strides = [1, 1]} : vector<24x384xf32> to vector<3x384xf32>
    %15 = vector.extract_strided_slice %4 {offsets = [15, 0], sizes = [3, 384], strides = [1, 1]} : vector<24x384xf32> to vector<3x384xf32>
    %16 = vector.extract_strided_slice %4 {offsets = [18, 0], sizes = [3, 384], strides = [1, 1]} : vector<24x384xf32> to vector<3x384xf32>
    %17 = vector.extract_strided_slice %4 {offsets = [21, 0], sizes = [3, 384], strides = [1, 1]} : vector<24x384xf32> to vector<3x384xf32>
    %18 = vector.extract_strided_slice %2 {offsets = [0, 0], sizes = [1, 384], strides = [1, 1]} : vector<3x384xf32> to vector<1x384xf32>
    %19 = vector.extract_strided_slice %2 {offsets = [1, 0], sizes = [1, 384], strides = [1, 1]} : vector<3x384xf32> to vector<1x384xf32>
    %20 = vector.extract_strided_slice %2 {offsets = [2, 0], sizes = [1, 384], strides = [1, 1]} : vector<3x384xf32> to vector<1x384xf32>
    %21 = vector.extract_strided_slice %3 {offsets = [0, 0], sizes = [3, 384], strides = [1, 1]} : vector<6x384xf32> to vector<3x384xf32>
    %22 = vector.extract_strided_slice %3 {offsets = [3, 0], sizes = [3, 384], strides = [1, 1]} : vector<6x384xf32> to vector<3x384xf32>
    %23 = vector.broadcast %20 : vector<1x384xf32> to vector<3x384xf32>
    %24 = arith.mulf %11, %23 : vector<3x384xf32>
    %25 = vector.broadcast %19 : vector<1x384xf32> to vector<3x384xf32>
    %26 = arith.addf %25, %24 : vector<3x384xf32>
    %27 = vector.broadcast %20 : vector<1x384xf32> to vector<3x384xf32>
    %28 = arith.mulf %12, %27 : vector<3x384xf32>
    %29 = vector.broadcast %18 : vector<1x384xf32> to vector<3x384xf32>
    %30 = arith.addf %29, %28 : vector<3x384xf32>
    %31 = math.exp %13 : vector<3x384xf32>
    %32 = arith.mulf %21, %31 : vector<3x384xf32>
    %33 = math.exp %14 : vector<3x384xf32>
    %34 = arith.mulf %22, %33 : vector<3x384xf32>
    %cst_8 = arith.constant 5.000000e-01 : f32
    %35 = vector.broadcast %cst_8 : f32 to vector<3x384xf32>
    %36 = arith.mulf %35, %32 : vector<3x384xf32>
    %37 = arith.subf %26, %36 : vector<3x384xf32>
    %cst_9 = arith.constant 5.000000e-01 : f32
    %38 = vector.broadcast %cst_9 : f32 to vector<3x384xf32>
    %39 = arith.mulf %38, %34 : vector<3x384xf32>
    %40 = arith.subf %30, %39 : vector<3x384xf32>
    %41 = arith.addf %37, %32 : vector<3x384xf32>
    %42 = arith.addf %40, %34 : vector<3x384xf32>
    %43 = arith.cmpf ogt, %16, %15 : vector<3x384xf32>
    %cst_10 = arith.constant 1.000000e+00 : f32
    %cst_11 = arith.constant 0.000000e+00 : f32
    %44 = vector.broadcast %cst_10 : f32 to vector<3x384xf32>
    %45 = vector.broadcast %cst_11 : f32 to vector<3x384xf32>
    %46 = arith.select %43, %44, %45 : vector<3x384xi1>, vector<3x384xf32>
    %47 = arith.maximumf %15, %16 : vector<3x384xf32>
    %48 = arith.cmpf ogt, %17, %47 : vector<3x384xf32>
    %cst_12 = arith.constant 2.000000e+00 : f32
    %49 = vector.broadcast %cst_12 : f32 to vector<3x384xf32>
    %50 = arith.select %48, %49, %46 : vector<3x384xi1>, vector<3x384xf32>
    %cst_13 = arith.constant 5.000000e-01 : f32
    %51 = vector.broadcast %cst_13 : f32 to vector<3x384xf32>
    %52 = arith.cmpf ogt, %10, %51 : vector<3x384xf32>
    %cst_14 = arith.constant 1.000000e+00 : f32
    %cst_15 = arith.constant 0.000000e+00 : f32
    %53 = vector.broadcast %cst_14 : f32 to vector<3x384xf32>
    %54 = vector.broadcast %cst_15 : f32 to vector<3x384xf32>
    %55 = arith.select %52, %53, %54 : vector<3x384xi1>, vector<3x384xf32>
    %cst_16 = arith.constant 0.000000e+00 : f32
    %56 = vector.broadcast %cst_16 : f32 to vector<3x384xf32>
    %57 = tpu.concatenate %10, %37, %40, %41, %42, %50, %55, %56 in 0 : vector<3x384xf32>, vector<3x384xf32>, vector<3x384xf32>, vector<3x384xf32>, vector<3x384xf32>, vector<3x384xf32>, vector<3x384xf32>, vector<3x384xf32> -> vector<24x384xf32>
    %c0_17 = arith.constant 0 : index
    %c0_18 = arith.constant 0 : index
    %58 = vector.load %arg5[%c0_17, %c0_18] : memref<24x384xf32, #tpu.memory_space<vmem>>, vector<24x384xf32>
    tpu.vector_store %arg5[%c0_17, %c0_18], %57 {strides = array<i32>} : memref<24x384xf32, #tpu.memory_space<vmem>>, vector<24x384xf32>,
    return
  }
  func.func @transform_0(%arg0: i32) -> (i32, i32) {
    %c0_i32 = arith.constant 0 : i32
    %c0_i32_0 = arith.constant 0 : i32
    return %c0_i32, %arg0 : i32, i32
  }
  func.func @transform_1(%arg0: i32) -> (i32, i32) {
    %c0_i32 = arith.constant 0 : i32
    %c0_i32_0 = arith.constant 0 : i32
    %c0_i32_1 = arith.constant 0 : i32
    return %c0_i32, %c0_i32_0 : i32, i32
  }
  func.func @transform_2(%arg0: i32) -> (i32, i32) {
    %c0_i32 = arith.constant 0 : i32
    %c0_i32_0 = arith.constant 0 : i32
    return %c0_i32, %arg0 : i32, i32
  }
  func.func @transform_3(%arg0: i32) -> (i32, i32) {
    %c0_i32 = arith.constant 0 : i32
    %c0_i32_0 = arith.constant 0 : i32
    return %c0_i32, %arg0 : i32, i32
  }
  func.func @transform_4(%arg0: i32) -> (i32, i32) {
    %c0_i32 = arith.constant 0 : i32
    %c0_i32_0 = arith.constant 0 : i32
    return %c0_i32, %arg0 : i32, i32
  }
}

</mosaic_0001>

<bundles_post_ra>
// kernel: pipeline.1
= control target key start
LH: loop header
LB: loop body
LE: loop exit
PB: predicated region body
PF: predicated region fallthrough
CT: control target
= control target key end

     0   :  { %9 = vsyncpa [#allocation4], 0  ;;  %s1315_s0 = inlined_call_operand.vmem [shape: f32[15,768], index: 0, kind: input, shape index: {}]   ;;  %s1316_s1 = inlined_call_operand.vmem [shape: f32[24,15], index: 1, kind: input, shape index: {}]   ;;  %s1317_s2 = inlined_call_operand.vmem [shape: f32[3,768], index: 2, kind: input, shape index: {}]   ;;  %s1318_s3 = inlined_call_operand.vmem [shape: f32[6,768], index: 3, kind: input, shape index: {}]   ;;  %s1319_s4 = inlined_call_operand.hbm [shape: f32[24,768], index: 4, kind: output, shape index: {}]  }
   0x1   :  { %11 = vsyncpa [#allocation4 + $0x1], 0  ;;  %s992_s15 = smov 0   ;;  %s994_s16 = smov 0  }
   0x2   :  { %s996_s17 = smov 0   ;;  %s998_s18 = smov 0  }
   0x3 LB: > { %s1013_s19 = sadd.s32 4294967295, %s961_s18   ;;  %s806_s20 = sadd.s32 4294967294, %s961_s18   ;;  %s961_s18 = sphi %s998_s18, %s1335_s18   ;;  %s957_s17 = sphi %s996_s17, %s1334_s17   ;;  %s953_s16 = sphi %s994_s16, %s1333_s16   ;;  %s949_s15 = sphi %s992_s15, %s1332_s15  }
   0x4   : > { %s1017_s21 = sadd.s32 1, %s961_s18   ;;  %s24_s22 = sadd.s32 1, %s957_s17 }
   0x5   : > { %s21_s23 = ssub.s32 %s961_s18, %s1017_s21  ;;  %p31_p0 = scmp.ne.s32.totalorder %s957_s17, %s953_s16 }
   0x6   : > { %p22_p1 = scmp.eq.s32.totalorder %s21_s23, 0  ;;  %p32_p2 = scmp.eq.s32.totalorder %s961_s18, 0 }
   0x7   : > { %p134_p3 = scmp.eq.s32.totalorder %s1013_s19, 1  ;;  %p139_p4 = scmp.ne.s32.totalorder %s953_s16, %s949_s15 }
   0x8   : > { %s1029_s24 = scalar_select %p22_p1, %s957_s17, %s24_s22  }
   0x9   : > { %p33_p5 = por %p32_p2, %p31_p0  ;;  %p1031_p6 = por %p134_p3, %p31_p0 }
   0xa   : > { %p140_p7 = scmp.eq.s32.totalorder %s806_s20, 1  ;;  %p808_p9 = scmp.ge.s32.totalorder %s961_s18, 2 }
   0xc   : > { %p1035_p8 = por %p140_p7, %p139_p4  ;;  %159 = sbr.rel (%p808_p9) target bundleno = 28 (0x1c), region = 20 }
  0x11   : > { %162 = sbr.rel (!%p33_p5) target bundleno = 28 (0x1c), region = 24  ;;  %s164_s27 = sand.u32 (%p33_p5), 1, %s957_s17  }
  0x12   : > { %s831_s28 = smul.u32 (%p33_p5), 24, %s961_s18 }
  0x13   : > { %s835_s29 = smul.u32 (%p33_p5), 48, %s164_s27 }
  0x14   : > { %s169_s6 = scalar_lea.vmem (%p33_p5), %s1315_s0, %s831_s28 }
  0x15   : > { %v182_v0 = vld [vmem:[%s169_s6] sm:$0xff] (%p33_p5)  ;;  %v184_v1 = vld [vmem:[%s169_s6 + $0x8] sm:$0xff] (%p33_p5)  ;;  %v186_v2 = vld [vmem:[%s169_s6 + $0x10] sm:$0xff] (%p33_p5)  ;;  %s166_s7 = scalar_lea.vmem (%p33_p5), [#allocation2], %s835_s29 }
  0x16   : > { %183 = vst [vmem:[%s166_s7] sm:$0xff] %v182_v0  ;;  %v188_v3 = vld [vmem:[%s169_s6 + $0x30] sm:$0xff]  ;;  %v190_v4 = vld [vmem:[%s169_s6 + $0x38] sm:$0xff]  ;;  %v192_v5 = vld [vmem:[%s169_s6 + $0x40] sm:$0xff] }
  0x17   : > { %185 = vst [vmem:[%s166_s7 + $0x8] sm:$0xff] %v184_v1 }
  0x18   : > { %187 = vst [vmem:[%s166_s7 + $0x10] sm:$0xff] %v186_v2 }
  0x19   : > { %189 = vst [vmem:[%s166_s7 + $0x18] sm:$0xff] %v188_v3 }
  0x1a   : > { %191 = vst [vmem:[%s166_s7 + $0x20] sm:$0xff] %v190_v4 }
  0x1b   : > { %193 = vst [vmem:[%s166_s7 + $0x28] sm:$0xff] %v192_v5 }
  0x1c PF: > { %p810_p10 = scmp.ge.s32.totalorder %s961_s18, 1  ;;  %p216_p11 = scmp.lt.s32.totalorder %s961_s18, 3 }
  0x1e   : > { %p217_p12 = pnand %p810_p10, %p216_p11 }
  0x1f   : > { %s1050_s8 = sand.u32 (!%p217_p12), 1, %s953_s16   ;;  %s259_s23 = smul.u32 (!%p217_p12), 3, %s1013_s19 }
  0x20   : > { %220 = sbr.rel (%p217_p12) target bundleno = 229 (0xe5), region = 55 }
  0x21   : > { %s836_s9 = smul.u32 (!%p217_p12), 48, %s1050_s8  ;;  %p260_p13 = scmp.lt.s32.totalorder (!%p217_p12), %s259_s23, 5 }
  0x22   : > { %s832_s12 = smul.u32 (!%p217_p12), 24, %s1013_s19 }
  0x23   : > { %s225_s10 = scalar_lea.vmem (!%p217_p12), [#allocation2], %s836_s9 }
  0x24   : > { %s710_s14 = scalar_lea.hbm (!%p217_p12), %s1319_s4, %s832_s12 }
  0x25   : > { %vm296_vm0 = vcmask 1046528   ;;  %v275_v6 = vld [vmem:[%s225_s10 + $0x18] sm:$0x7f]  ;;  %v276_v7 = vld [vmem:[%s225_s10 + $0x20] sm:$0x7f]  ;;  %v273_v10 = vld [vmem:[%s225_s10 + $0x8] sm:$0xff] }
  0x26   : > { %v272_v8 = vld [vmem:[%s225_s10] sm:$0xff]  ;;  %813 = vmatpush.msk.msra.mxu0 %vm296_vm0, %v275_v6  ;;  %833 = vmatpush.msk.msra.mxu3 %vm296_vm0, %v275_v6  ;;  %v277_v9 = vld [vmem:[%s225_s10 + $0x28] sm:$0x7f]  ;;  %v274_v11 = vld [vmem:[%s225_s10 + $0x10] sm:$0xff]  ;;  %vm286_vm1 = vcmask 121856   ;;  %s1337_s23 = smov (!%p260_p13, %s259_s23), 5 }
  0x27   : > { %817 = vmatpush.msk.msra.mxu1 %vm296_vm0, %v276_v7  ;;  %821 = vmatpush.msk.msra.mxu2 %vm296_vm0, %v277_v9  ;;  %v278_v12 = vld [vmem:[%s1316_s1] sm:$0xff]  ;;  %v279_v13 = vld [vmem:[%s1316_s1 + $0x8] sm:$0xff]  ;;  %v280_v14 = vld [vmem:[%s1316_s1 + $0x10] sm:$0xff]  ;;  %s811_s27 = sshll.u32 %s1337_s23, 2  ;;  %s812_s5 = sshll.u32 %s1337_s23, 3  ;;  %vm548_vm2 = vcmask 1042432  }
  0x28   : > { %321 = vmatpush.msra.mxu0 %v272_v8  ;;  %834 = vmatpush.msra.mxu3 %v272_v8  ;;  %s263_s30 = scalar_lea.vmem %s1317_s2, %s811_s27  ;;  %s1089_s9 = scalar_lea.vmem %s1318_s3, %s812_s5  ;;  %vm670_vm5 = vcmask 1040384   ;;  %vm585_vm7 = vcmask 1045504   ;;  %vm674_vm11 = vcmask 1043456   ;;  %vm681_vm13 = vcmask 1041408  }
  0x29   : > { %347 = vmatpush.msra.mxu1 %v273_v10  ;;  %373 = vmatpush.msra.mxu2 %v274_v11  ;;  %v281_v15 = vld [vmem:[%s263_s30] sm:$0x77]  ;;  %v282_v18 = vld [vmem:[%s263_s30 + $0x8] sm:$0x7]  ;;  %vm685_vm15 = vcmask 1044480   ;;  %s837_s10 = smul.u32 72, %s1050_s8 }
  0x2a   : > { %814 = vmatmul.msk.f32.vlgmr.msra.gmra.mxu0 %vm286_vm1, %v278_v12  ;;  %815 = vmatmul.msk.f32.vlgmr.msra.gmra.mxu3 %vm286_vm1, %v279_v13  ;;  %v443_v16 = vperm.slane %v281_v15, 2  ;;  %v444_v17 = vperm.slane %v281_v15, 6  ;;  %v455_v23 = vperm.slane %v281_v15, 1  ;;  %v445_v25 = vperm.slane %v282_v18, 2  ;;  %v283_v62 = vld [vmem:[%s1089_s9] sm:$0x3f] }
  0x2b   : > { %818 = vmatmul.msk.f32.vlgmr.msra.gmra.mxu1 %vm286_vm1, %v278_v12  ;;  %822 = vmatmul.msk.f32.vlgmr.msra.gmra.mxu2 %vm286_vm1, %v278_v12  ;;  %v470_v26 = vperm.slane %v281_v15, 0  ;;  %v456_v28 = vperm.slane %v281_v15, 5  ;;  %v471_v29 = vperm.slane %v281_v15, 4  ;;  %v457_v30 = vperm.slane %v282_v18, 1  ;;  %s1225_s11 = scalar_lea.vmem [#allocation3], %s837_s10  ;;  %s713_s22 = sshll.u32 %s710_s14, 4  ;;  %s714_s22 = int_to_ptr.hbm [resolvable:$true] %s713_s22 }
  0x2c   : > { %v449_v22 = vperm.slane %v443_v16, 2  ;;  %v450_v27 = vperm.slane %v444_v17, 2  ;;  %v472_v31 = vperm.slane %v282_v18, 0  ;;  %v461_v33 = vperm.slane %v455_v23, 1  ;;  %s711_s20 = sshll.u32 %s1225_s11, 4  ;;  %s699_s23 = scalar_lea.sflag [#allocation4], %s1050_s8  ;;  %s1277_s20 = int_to_ptr.vmem [resolvable:$true] %s711_s20 }
  0x2d   : > { %v451_v35 = vperm.slane %v445_v25, 2  ;;  %v476_v36 = vperm.slane %v470_v26, 0  ;;  %v462_v38 = vperm.slane %v456_v28, 1  ;;  %v477_v41 = vperm.slane %v471_v29, 0  ;;  %s913_s27 = sshra.s32 %s714_s22, 4  ;;  %s919_s5 = scalar_lea.hbm %s1319_s4, 144  ;;  %s914_s27 = int_to_ptr.hbm [resolvable:$true] %s913_s27 }
  0x2e   : > { %v463_v43 = vperm.slane %v457_v30, 1  ;;  %v478_v44 = vperm.slane %v472_v31, 0  ;;  %v284_v30 = vld [vmem:[%s1089_s9 + $0x8] sm:$0x3f]  ;;  %s915_s28 = scalar_lea.hbm %s914_s27, 72  ;;  %p920_p3 = scmp.lt.s32.totalorder %s914_s27, %s1319_s4 }
  0x2f   : > { %p916_p0 = scmp.ne.s32.totalorder %s914_s27, %s915_s28  ;;  %p921_p4 = scmp.lt.s32.totalorder %s919_s5, %s915_s28 }
  0x31   : > { %p917_p1 = pnand %p916_p0, %p1031_p6  ;;  %p922_p5 = por %p921_p4, %p920_p3 }
  0x32   : > { %816 = vmatmul.msk.f32.gmra.mxu3 %vm286_vm1, %v280_v14 }
  0x33   : > { %819 = vmatmul.msk.f32.gmra.mxu1 %vm286_vm1, %v279_v13  ;;  %823 = vmatmul.msk.f32.gmra.mxu2 %vm286_vm1, %v279_v13  ;;  %p918_p2 = pneg %p917_p1 }
  0x35   : > { %p923_p7 = pnand %p922_p5, %p918_p2 }
  0x3b   : > { %820 = vmatmul.msk.f32.gmra.mxu1 %vm286_vm1, %v280_v14  ;;  %824 = vmatmul.msk.f32.gmra.mxu2 %vm286_vm1, %v280_v14 }
  0xa7   : > { %v323_v19 = vpop.f32.mrf.mxu0 }
  0xa8   : > { %v825_v20 = vmul.f32 -1.442695, %v323_v19  ;;  %v349_v21 = vpop.f32.mrf.mxu1  ;;  %v452_v32 = vmul.f32 %v449_v22, %v323_v19 }
  0xa9   : > { %v826_v24 = vmul.f32 -1.442695, %v349_v21  ;;  %v453_v37 = vmul.f32 %v450_v27, %v349_v21 }
  0xaa   : > { %881 = vpow2.f32 %v825_v20  ;;  %v1078_v50 = vadd.f32 %v461_v33, %v452_v32  ;;  %v1080_v52 = vadd.f32 %v476_v36, %v452_v32 }
  0xab   : > { %883 = vpow2.f32 %v826_v24  ;;  %v1084_v54 = vadd.f32 %v462_v38, %v453_v37  ;;  %v1094_v57 = vadd.f32 %v477_v41, %v453_v37 }
  0xad   : > { %v326_v34 = vpop.f32.mrf.mxu3 }
  0xae   : > { %v485_v39 = vmul.f32 1.442695, %v326_v34  ;;  %v375_v40 = vpop.f32.mrf.mxu2  ;;  %v467_v46 = vmul.f32 %v449_v22, %v326_v34  ;;  %v549_v58 = vrot.slane %v326_v34, 5 }
  0xaf   : > { %v827_v42 = vmul.f32 -1.442695, %v375_v40  ;;  %v454_v51 = vmul.f32 %v451_v35, %v375_v40  ;;  %v963_v40 = vmov 0.0  }
  0xb0   : > { %v882_v45 = vpop.eup %881  ;;  %885 = vpow2.f32 %v485_v39  ;;  %v1074_v47 = vpop.f32.mrf.mxu1  ;;  %v482_v60 = vadd.f32 %v476_v36, %v467_v46 }
  0xb1   : > { %v884_v48 = vpop.eup %883  ;;  %v1076_v49 = vadd.f32 1.0, %v882_v45  ;;  %887 = vpow2.f32 %v827_v42  ;;  %v487_v55 = vmul.f32 1.442695, %v1074_v47  ;;  %v468_v61 = vmul.f32 %v450_v27, %v1074_v47 }
  0xb2   : > { %v1082_v53 = vadd.f32 1.0, %v884_v48  ;;  %v1100_v63 = vadd.f32 %v463_v43, %v454_v51  ;;  %v1102_v0 = vadd.f32 %v478_v44, %v454_v51  ;;  %v552_v1 = vrot.slane %v1074_v47, 5 }
  0xb3   : > { %889 = vrcp.f32 %v1076_v49  ;;  %v407_v56 = vand.u32 2147483648, %v1076_v49  ;;  %vm401_vm3 = vweird.f32 %v1076_v49  ;;  %v405_v4 = vand.u32 2147483647, %v1076_v49 }
  0xb4   : > { %891 = vrcp.f32 %v1082_v53  ;;  %v422_v59 = vand.u32 2147483648, %v1082_v53  ;;  %v420_v5 = vand.u32 2147483647, %v1082_v53  ;;  %v1122_v16 = vadd.f32 %v477_v41, %v468_v61 }
  0xb5   : > { %893 = vpow2.f32 %v487_v55  ;;  %v1105_v2 = vpop.f32.mrf.mxu3  ;;  %v1114_v10 = vor.u32 1.1754944e-38, %v407_v56  ;;  %vm1134_vm4 = vcmp.eq.f32.partialorder %v405_v4, 8.507059e+37  ;;  %vm416_vm9 = vweird.f32 %v1082_v53 }
  0xb6   : > { %v886_v3 = vpop.eup %885  ;;  %v550_v6 = vrot.slane %v1105_v2, 5  ;;  %v567_v7 = vrot.slane %v1105_v2, 3  ;;  %v1112_v8 = vpop.f32.mrf.mxu2  ;;  %v1118_v14 = vor.u32 1.1754944e-38, %v422_v59  ;;  %vm1170_vm1 = vcmp.eq.f32.partialorder %v420_v5, 8.507059e+37 }
  0xb7   : > { %v888_v9 = vpop.eup %887  ;;  %v494_v11 = vrot.slane %v886_v3, 1  ;;  %v469_v12 = vmul.f32 %v451_v35, %v1112_v8  ;;  %v489_v13 = vmul.f32 1.442695, %v1112_v8  ;;  %v555_v22 = vrot.slane %v1112_v8, 5 }
  0xb8   : > { %v1120_v15 = vadd.f32 1.0, %v888_v9  ;;  %v551_v17 = vsel %vm548_vm2, %v549_v58, %v550_v6  ;;  %v1125_v20 = vmax.f32 %v326_v34, %v567_v7  ;;  %v1128_v21 = vmax.f32 %v1105_v2, %v567_v7 }
  0xb9   : > { %v890_v18 = vpop.eup %889  ;;  %v500_v19 = vmul.f32 %v494_v11, %v283_v62  ;;  %vm561_vm6 = vcmp.gt.f32.partialorder %v1105_v2, %v551_v17  ;;  %v1140_v26 = vadd.f32 %v478_v44, %v469_v12 }
  0xba   : > { %v1131_v23 = vpop.eup %891  ;;  %v397_v24 = vmul.f32 %v890_v18, %v1076_v49  ;;  %895 = vrcp.f32 %v1120_v15  ;;  %vm402_vm8 = vweird.f32 %v890_v18  ;;  %v437_v32 = vand.u32 2147483648, %v1120_v15 }
  0xbb   : > { %v894_v27 = vpop.eup %893  ;;  %v412_v28 = vmul.f32 %v1131_v23, %v1082_v53  ;;  %v503_v29 = vmul.f32 0.5, %v500_v19  ;;  %897 = vpow2.f32 %v489_v13  ;;  %vm417_vm10 = vweird.f32 %v1131_v23  ;;  %vm403_vm14 = vmor %vm401_vm3, %vm402_vm8 }
  0xbc   : > { %v398_v31 = vsub.f32 1.0, %v397_v24  ;;  %v495_v33 = vrot.slane %v894_v27, 1  ;;  %v527_v36 = vrot.slane %v500_v19, 5  ;;  %v435_v37 = vand.u32 2147483647, %v1120_v15 }
  0xbd   : > { %v413_v34 = vsub.f32 1.0, %v412_v28  ;;  %v509_v35 = vrot.slane %v503_v29, 5  ;;  %v564_v41 = vsel %vm561_vm6, 1.0, %v963_v40  ;;  %v586_v42 = vrot.slane %v1125_v20, 2  ;;  %vm1192_vm6 = vmor %vm416_vm9, %vm417_vm10 }
  0xbe   : > { %v399_v38 = vmul.f32 %v890_v18, %v398_v31  ;;  %v501_v39 = vmul.f32 %v495_v33, %v284_v30  ;;  %vm431_vm12 = vweird.f32 %v1120_v15  ;;  %v1159_v55 = vor.u32 1.1754944e-38, %v437_v32 }
  0xbf   : > { %v414_v43 = vmul.f32 %v1131_v23, %v413_v34  ;;  %v515_v44 = vsub.f32 %v1078_v50, %v509_v35  ;;  %v518_v45 = vsub.f32 %v1080_v52, %v509_v35  ;;  %v521_v46 = vsub.f32 %v482_v60, %v509_v35  ;;  %v355_v35 = vpop.f32.mrf.mxu1 }
  0xc0   : > { %v1156_v48 = vpop.eup %895  ;;  %v400_v51 = vadd.f32 %v890_v18, %v399_v38  ;;  %v504_v56 = vmul.f32 0.5, %v501_v39  ;;  %v528_v58 = vrot.slane %v501_v39, 5  ;;  %v587_v61 = vrot.slane %v1128_v21, 2 }
  0xc1   : > { %v1161_v59 = vpop.eup %897  ;;  %v533_v50 = vadd.f32 %v527_v36, %v515_v44  ;;  %v536_v52 = vadd.f32 %v527_v36, %v518_v45  ;;  %v539_v60 = vadd.f32 %v527_v36, %v521_v46  ;;  %v415_v3 = vadd.f32 %v1131_v23, %v414_v43 }
  0xc2   : > { %v404_v62 = vsel %vm403_vm14, %v890_v18, %v400_v51  ;;  %v427_v49 = vmul.f32 %v1156_v48, %v1120_v15  ;;  %v510_v6 = vrot.slane %v504_v56, 5  ;;  %vm432_vm3 = vweird.f32 %v1156_v48  ;;  %v285_v15 = vld [vmem:[%s1089_s9 + $0x10] sm:$0x3f] }
  0xc3   : > { %v409_v7 = vsel %vm1134_vm4, %v1114_v10, %v404_v62  ;;  %v622_v9 = vrot.slane %v533_v50, 2  ;;  %v634_v11 = vrot.slane %v536_v52, 2  ;;  %v635_v12 = vrot.slane %v539_v60, 2  ;;  %vm1210_vm9 = vmor %vm431_vm12, %vm432_vm3 }
  0xc4   : > { %v428_v13 = vsub.f32 1.0, %v427_v49  ;;  %v516_v5 = vsub.f32 %v1084_v54, %v510_v6  ;;  %v519_v17 = vsub.f32 %v1094_v57, %v510_v6  ;;  %v522_v19 = vsub.f32 %v1122_v16, %v510_v6 }
  0xc5   : > { %v671_v18 = vsel %vm670_vm5, %v521_v46, %v622_v9  ;;  %v588_v20 = vsel %vm585_vm7, %v586_v42, %v587_v61  ;;  %v604_v21 = vrot.slane %v564_v41, 5  ;;  %vm613_vm8 = vcmp.gt.f32.partialorder %v409_v7, 0.5  ;;  %v381_v61 = vpop.f32.mrf.mxu2 }
  0xc6   : > { %v429_v10 = vmul.f32 %v1156_v48, %v428_v13  ;;  %v534_v24 = vadd.f32 %v528_v58, %v516_v5  ;;  %v537_v25 = vadd.f32 %v528_v58, %v519_v17  ;;  %vm598_vm4 = vcmp.gt.f32.partialorder %v1105_v2, %v588_v20 }
  0xc7   : > { %v540_v57 = vadd.f32 %v528_v58, %v522_v19  ;;  %v610_v27 = vsel %vm598_vm4, 2.0, %v604_v21  ;;  %v636_v16 = vsel %vm585_vm7, %v634_v11, %v635_v12  ;;  %v419_v28 = vsel %vm1192_vm6, %v1131_v23, %v415_v3 }
  0xc8   : > { %v430_v2 = vadd.f32 %v1156_v48, %v429_v10  ;;  %vm1201_vm14 = vcmp.eq.f32.partialorder %v435_v37, 8.507059e+37  ;;  %v623_v53 = vrot.slane %v534_v24, 2  ;;  %v616_v30 = vsel %vm613_vm8, 1.0, %v963_v40 }
  0xc9   : > { %v637_v32 = vrot.slane %v537_v25, 2  ;;  %v649_v23 = vrot.slane %v610_v27, 6  ;;  %v658_v33 = vrot.slane %v616_v30, 6  ;;  %v664_v34 = vsel %vm548_vm2, %v409_v7, %v515_v44 }
  0xca   : > { %v434_v36 = vsel %vm1210_vm9, %v1156_v48, %v430_v2  ;;  %v638_v37 = vrot.slane %v540_v57, 2  ;;  %v667_v38 = vsel %vm585_vm7, %v664_v34, %v518_v45  ;;  %v675_v39 = vsel %vm674_vm11, %v671_v18, %v636_v16 }
  0xcb   : > { %v678_v41 = vsel %vm296_vm0, %v675_v39, %v649_v23  ;;  %v682_v42 = vsel %vm681_vm13, %v649_v23, %v658_v33  ;;  %689 = vst [vmem:[%s1225_s11] sm:$0xff] %v667_v38  ;;  %v496_v43 = vrot.slane %v1161_v59, 1  ;;  %v424_v44 = vsel %vm1170_vm1, %v1118_v14, %v419_v28 }
  0xcc   : > { %v686_v45 = vsel %vm685_vm15, %v682_v42, 0.0  ;;  %692 = vst [vmem:[%s1225_s11 + $0x18] sm:$0xff] %v678_v41  ;;  %v553_v46 = vrot.slane %v355_v35, 5  ;;  %v568_v48 = vrot.slane %v355_v35, 3  ;;  %vm614_vm10 = vcmp.gt.f32.partialorder %v424_v44, 0.5 }
  0xcd   : > { %v672_v51 = vsel %vm670_vm5, %v522_v19, %v623_v53  ;;  %695 = vst [vmem:[%s1225_s11 + $0x30] sm:$0xff] %v686_v45  ;;  %v502_v56 = vmul.f32 %v496_v43, %v285_v15  ;;  %v617_v58 = vsel %vm614_vm10, 1.0, %v963_v40  ;;  %v665_v50 = vsel %vm548_vm2, %v424_v44, %v516_v5 }
  0xce   : > { %v554_v59 = vsel %vm548_vm2, %v552_v1, %v553_v46  ;;  %v574_v14 = vmax.f32 %v1074_v47, %v568_v48  ;;  %v577_v52 = vmax.f32 %v355_v35, %v568_v48  ;;  %v639_v60 = vsel %vm585_vm7, %v637_v32, %v638_v37 }
  0xcf   : > { %v505_v62 = vmul.f32 0.5, %v502_v56  ;;  %vm562_vm12 = vcmp.gt.f32.partialorder %v355_v35, %v554_v59  ;;  %v659_v3 = vrot.slane %v617_v58, 6  ;;  %v668_v4 = vsel %vm585_vm7, %v665_v50, %v519_v17 }
  0xd0   : > { %v529_v49 = vrot.slane %v502_v56, 5  ;;  %v565_v6 = vsel %vm562_vm12, 1.0, %v963_v40  ;;  %v589_v7 = vrot.slane %v574_v14, 2  ;;  %v590_v9 = vrot.slane %v577_v52, 2  ;;  %690 = vst [vmem:[%s1225_s11 + $0x8] sm:$0xff] %v668_v4 }
  0xd1   : > { %v511_v11 = vrot.slane %v505_v62, 5  ;;  %v605_v1 = vrot.slane %v565_v6, 5  ;;  %v439_v47 = vsel %vm1201_vm14, %v1159_v55, %v434_v36  ;;  %v556_v12 = vrot.slane %v381_v61, 5 }
  0xd2   : > { %v591_v13 = vsel %vm585_vm7, %v589_v7, %v590_v9  ;;  %v676_v5 = vsel %vm674_vm11, %v672_v51, %v639_v60  ;;  %v569_v18 = vrot.slane %v381_v61, 3  ;;  %vm615_vm1 = vcmp.gt.f32.partialorder %v439_v47, 0.5 }
  0xd3   : > { %v517_v17 = vsub.f32 %v1100_v63, %v511_v11  ;;  %v520_v19 = vsub.f32 %v1102_v0, %v511_v11  ;;  %v523_v20 = vsub.f32 %v1140_v26, %v511_v11  ;;  %vm599_vm3 = vcmp.gt.f32.partialorder %v355_v35, %v591_v13 }
  0xd4   : > { %v611_v21 = vsel %vm599_vm3, 2.0, %v605_v1  ;;  %v557_v10 = vsel %vm548_vm2, %v555_v22, %v556_v12  ;;  %v575_v55 = vmax.f32 %v1112_v8, %v569_v18  ;;  %v578_v24 = vmax.f32 %v381_v61, %v569_v18 }
  0xd5   : > { %v535_v25 = vadd.f32 %v529_v49, %v517_v17  ;;  %v538_v54 = vadd.f32 %v529_v49, %v520_v19  ;;  %v541_v57 = vadd.f32 %v529_v49, %v523_v20  ;;  %v650_v63 = vrot.slane %v611_v21, 6 }
  0xd6   : > { %vm563_vm4 = vcmp.gt.f32.partialorder %v381_v61, %v557_v10  ;;  %v592_v0 = vrot.slane %v575_v55, 2  ;;  %v593_v27 = vrot.slane %v578_v24, 2  ;;  %v618_v26 = vsel %vm615_vm1, 1.0, %v963_v40 }
  0xd7   : > { %v624_v16 = vrot.slane %v535_v25, 2  ;;  %v640_v28 = vrot.slane %v538_v54, 2  ;;  %v641_v22 = vrot.slane %v541_v57, 2  ;;  %v679_v8 = vsel %vm296_vm0, %v676_v5, %v650_v63 }
  0xd8   : > { %v683_v2 = vsel %vm681_vm13, %v650_v63, %v659_v3  ;;  %693 = vst [vmem:[%s1225_s11 + $0x20] sm:$0xff] %v679_v8  ;;  %v566_v29 = vsel %vm563_vm4, 1.0, %v963_v40  ;;  %v594_v53 = vsel %vm585_vm7, %v592_v0, %v593_v27  ;;  %v660_v40 = vrot.slane %v618_v26, 6 }
  0xd9   : > { %v673_v30 = vsel %vm670_vm5, %v523_v20, %v624_v16  ;;  %v687_v31 = vsel %vm685_vm15, %v683_v2, 0.0  ;;  %vm600_vm6 = vcmp.gt.f32.partialorder %v381_v61, %v594_v53  ;;  %v606_v32 = vrot.slane %v566_v29, 5 }
  0xda   : > { %696 = vst [vmem:[%s1225_s11 + $0x38] sm:$0xff] %v687_v31  ;;  %v642_v23 = vsel %vm585_vm7, %v640_v28, %v641_v22  ;;  %v666_v33 = vsel %vm548_vm2, %v439_v47, %v517_v17 }
  0xdb   : > { %v612_v34 = vsel %vm600_vm6, 2.0, %v606_v32  ;;  %v669_v35 = vsel %vm585_vm7, %v666_v33, %v520_v19  ;;  %v677_v36 = vsel %vm674_vm11, %v673_v30, %v642_v23 }
  0xdc   : > { %v651_v37 = vrot.slane %v612_v34, 6  ;;  %691 = vst [vmem:[%s1225_s11 + $0x10] sm:$0xff] %v669_v35 }
  0xde   : > { %v680_v38 = vsel %vm296_vm0, %v677_v36, %v651_v37  ;;  %v684_v39 = vsel %vm681_vm13, %v651_v37, %v660_v40 }
  0xdf   : > { %v688_v15 = vsel %vm685_vm15, %v684_v39, 0.0  ;;  %694 = vst [vmem:[%s1225_s11 + $0x28] sm:$0xff] %v680_v38 }
  0xe0   : > { %697 = vst [vmem:[%s1225_s11 + $0x40] sm:$0xff] %v688_v15 }
  0xe1   : > { %926 = shalt.err (!%p923_p7)
}
  0xe2   : > { %s964_s8 = smov 384   ;;  %s965_s9 = smov 768  }
  0xe3   : > { %s966_s10 = smov 24  }
  0xe4   : > { %838 = dma.vmem_to_hbm [thread:$0]  (%p1031_p6), %s1277_s20, 1152, %s714_s22, %s699_s23, %s964_s8, %s965_s9, %s966_s10  }
  0xe5 PF: > { %s728_s11 = sand.u32 1, %s949_s15   ;;  %p841_p10 = pnand %p808_p9, %p1035_p8 }
  0xe6   : > { %s729_s12 = scalar_lea.sflag [#allocation4], %s728_s11 }
  0xe7   : > { %p842_p11 = pneg %p841_p10 }
  0xe9   : > { %944 = dma.done.wait (%p842_p11), %s729_s12, 1152  }
  0xea   : > { %946 = vsyncadd (%p842_p11), %s729_s12, 4294966144  ;;  %p14_p12 = scmp.ge.s32.totalorder %s1017_s21, 4   ;;  %s1332_s15 = smov %s953_s16 }
  0xeb   : > { %s1333_s16 = smov %s957_s17  ;;  %s1334_s17 = smov %s1029_s24 }
  0xec   : > { %s1335_s18 = smov %s1017_s21  ;;  %16 = sbr.rel (!%p14_p12) target bundleno = 3 (0x3), region = 105 }
  0xf1   :  { %735 = vsyncpa [#allocation4], 1 }
  0xf2   :  { %737 = vsyncpa [#allocation4 + $0x1], 1 }

</bundles_post_ra>
